<compile_context>
chip_gen: v7x
topology: tpu7x:2x2x1
jax: 0.10.0
libtpu: 0.0.40
codegen_flags: <defaults>
</compile_context>

<pallas_src>
import functools
import math

import jax
import jax.numpy as jnp
from jax.experimental import pallas as pl
from jax.experimental.pallas import tpu as pltpu

F32 = jnp.float32
BF16 = jnp.bfloat16


# --------------------------------------------------------------------------
# In-kernel helpers (operate on loaded values, not refs)
# --------------------------------------------------------------------------
def _mm(a, b):
    """MXU matmul: bf16 operands, f32 accumulation."""
    return jnp.dot(a.astype(BF16), b.astype(BF16), preferred_element_type=jnp.float32)


def _ln(x, w, b, eps):
    x = x.astype(jnp.float32)
    mu = jnp.mean(x, axis=-1, keepdims=True)
    var = jnp.mean(jnp.square(x - mu), axis=-1, keepdims=True)
    return (x - mu) * jax.lax.rsqrt(var + eps) * w + b


def _gelu(x):
    # TODO(synk): PyTorch nn.GELU default is exact erf; tanh approximation used here.
    return jax.nn.gelu(x, approximate=True)


def _attn_core(q, k, v, ow, ob, B, Lq, Lk, nh, kv_chunk=512):
    """Multi-head attention core fused with the output projection.

    q/k/v: (B*Lq, internal) / (B*Lk, internal).  The per-head output projection
    slice is applied inside the head loop and summed into one accumulator, so
    there is no lane-axis concatenate.  When Lk > kv_chunk the softmax is done
    online over KV chunks so the score tile never exceeds O(Lq * kv_chunk).
    """
    internal = q.shape[-1]
    hd = internal // nh
    scale = 1.0 / math.sqrt(hd)
    out = jnp.zeros((B * Lq, ow.shape[-1]), jnp.float32) + ob
    for h in range(nh):
        qh = q[:, h * hd:(h + 1) * hd].reshape(B, Lq, hd)
        kh = k[:, h * hd:(h + 1) * hd].reshape(B, Lk, hd)
        vh = v[:, h * hd:(h + 1) * hd].reshape(B, Lk, hd)
        if Lk <= kv_chunk:
            s = jnp.einsum("bqd,bkd->bqk", qh.astype(BF16), kh.astype(BF16),
                           preferred_element_type=jnp.float32) * scale
            s = s - jnp.max(s, axis=-1, keepdims=True)
            p = jnp.exp(s)
            p = p * pl.reciprocal(jnp.sum(p, axis=-1, keepdims=True), approx=True)
            o = jnp.einsum("bqk,bkd->bqd", p.astype(BF16), vh.astype(BF16),
                           preferred_element_type=jnp.float32)
        else:
            m = jnp.full((B, Lq, 1), -jnp.inf, jnp.float32)
            l = jnp.zeros((B, Lq, 1), jnp.float32)
            acc = jnp.zeros((B, Lq, hd), jnp.float32)
            for c0 in range(0, Lk, kv_chunk):
                c1 = min(c0 + kv_chunk, Lk)
                kc = kh[:, c0:c1, :]
                vc = vh[:, c0:c1, :]
                s = jnp.einsum("bqd,bkd->bqk", qh.astype(BF16), kc.astype(BF16),
                               preferred_element_type=jnp.float32) * scale
                mn = jnp.maximum(m, jnp.max(s, axis=-1, keepdims=True))
                a = jnp.exp(m - mn)
                p = jnp.exp(s - mn)
                l = a * l + jnp.sum(p, axis=-1, keepdims=True)
                acc = a * acc + jnp.einsum("bqk,bkd->bqd", p.astype(BF16), vc.astype(BF16),
                                           preferred_element_type=jnp.float32)
                m = mn
            o = acc * pl.reciprocal(l, approx=True)
        out = out + _mm(o.reshape(B * Lq, hd), ow[h * hd:(h + 1) * hd, :])
    return out


def _mha(xq, xk, xv, w, nh):
    """Full multi-head attention (projections + sdpa + output projection)."""
    qw, qb, kw, kb, vw, vb, ow, ob = w
    B, Lq, _ = xq.shape
    Lk = xk.shape[1]
    q = _mm(xq.reshape(B * Lq, xq.shape[-1]), qw) + qb
    k = _mm(xk.reshape(B * Lk, xk.shape[-1]), kw) + kb
    v = _mm(xv.reshape(B * Lk, xv.shape[-1]), vw) + vb
    o = _attn_core(q, k, v, ow, ob, B, Lq, Lk, nh)
    return o.reshape(B, Lq, ow.shape[-1])


def _lin(x3, w, b):
    B, L, C = x3.shape
    return (_mm(x3.reshape(B * L, C), w) + b).reshape(B, L, w.shape[-1])


def _ld(*refs):
    return tuple(r[...] for r in refs)


def _roll_rows(x, off):
    """result[r] = x[(r + off) % N] along axis 0, static off (two-slice rotate)."""
    N = x.shape[0]
    s = off % N
    if s == 0:
        return x
    return jnp.concatenate([x[s:], x[:s]], axis=0)


# --------------------------------------------------------------------------
# Pallas kernels
# --------------------------------------------------------------------------
def _patch_embed_kernel(x_ref, w_ref, b_ref, pos_ref, o_ref):
    # x: (B, Lblk, K) raw patches; normalization already folded into w/b.
    B, Lb, K = x_ref.shape
    C = w_ref.shape[-1]
    y = _mm(x_ref[...].reshape(B * Lb, K), w_ref[...]) + b_ref[...]
    o_ref[...] = y.reshape(B, Lb, C) + pos_ref[...]


def _vit_blocks_kernel(x_ref, ln1w, ln1b, qkvw, qkvb, projw, projb,
                       ln2w, ln2b, mw1, mb1, mw2, mb2,
                       interm_ref, final_ref, x_state, *, nh):
    # One grid step per ViT block; token state carried in a VMEM scratch.
    # TODO(synk): windowed attention / decomposed rel-pos of ImageEncoderViT omitted.
    @pl.when(pl.program_id(0) == 0)
    def _():
        x_state[...] = x_ref[...]

    x = x_state[...]
    B, L, C = x.shape

    t = _ln(x, ln1w[...], ln1b[...], 1e-6).reshape(B * L, C)
    qkv = _mm(t, qkvw[...]) + qkvb[...]
    q = qkv[:, :C]
    k = qkv[:, C:2 * C]
    v = qkv[:, 2 * C:]
    o = _attn_core(q, k, v, projw[...], projb[...], B, L, L, nh)
    x = x + o.reshape(B, L, C)

    t = _ln(x, ln2w[...], ln2b[...], 1e-6).reshape(B * L, C)
    h = _gelu(_mm(t, mw1[...]) + mb1[...])
    h = _mm(h, mw2[...]) + mb2[...]
    x = x + h.reshape(B, L, C)

    x_state[...] = x
    interm_ref[...] = x.astype(interm_ref.dtype)        # bf16 HBM writeback

    @pl.when(pl.program_id(0) == pl.num_programs(0) - 1)
    def _():
        final_ref[...] = x                               # f32 final state, once


def _neck_kernel(y_ref, w1_ref, ln1w_ref, ln1b_ref, w2s_ref, ln2w_ref, ln2b_ref,
                 o_ref, *, Hp, Wp):
    # 1x1 conv -> LayerNorm2d -> 3x3 conv (pad 1) -> LayerNorm2d, all in VMEM.
    # The 3x3 conv is im2col (9 shifted+edge-masked tiles concatenated on the lane
    # axis) followed by ONE K=9*Cp matmul against the stacked weight.
    _, L, C = y_ref.shape
    Cp = w1_ref.shape[-1]
    z = _mm(y_ref[...].reshape(L, C), w1_ref[...])       # bias-free 1x1 conv
    z = _ln(z, ln1w_ref[...], ln1b_ref[...], 1e-6)

    r = jax.lax.broadcasted_iota(jnp.int32, (L, 1), 0)
    h_idx = r // Wp
    w_idx = r % Wp
    cols = []
    for di in (-1, 0, 1):
        for dj in (-1, 0, 1):
            off = di * Wp + dj
            shifted = _roll_rows(z, off)
            valid = ((h_idx + di >= 0) & (h_idx + di < Hp) &
                     (w_idx + dj >= 0) & (w_idx + dj < Wp))
            cols.append(jnp.where(valid, shifted, 0.0))
    patches = jnp.concatenate(cols, axis=-1)             # (L, 9*Cp)
    acc = _mm(patches, w2s_ref[...])
    o_ref[...] = _ln(acc, ln2w_ref[...], ln2b_ref[...], 1e-6).reshape(1, L, Cp)


def _dense_pe_kernel(gauss_ref, o_ref, *, H, W):
    ys = (jax.lax.broadcasted_iota(jnp.int32, (H, W), 0).astype(jnp.float32) + 0.5) / H
    xs = (jax.lax.broadcasted_iota(jnp.int32, (H, W), 1).astype(jnp.float32) + 0.5) / W
    cx = 2.0 * xs - 1.0
    cy = 2.0 * ys - 1.0
    g = gauss_ref[...]
    proj = 2.0 * jnp.pi * (cx[..., None] * g[0:1, :] + cy[..., None] * g[1:2, :])
    o_ref[...] = jnp.concatenate([jnp.sin(proj), jnp.cos(proj)], axis=-1)


def _point_embed_kernel(coords_ref, labels_ref, gauss_ref, nap_ref, pe0_ref, pe1_ref,
                        o_ref, *, in_h, in_w):
    c = coords_ref[...].astype(jnp.float32) + 0.5          # shift to pixel centers
    cx = 2.0 * (c[..., 0:1] / in_w) - 1.0
    cy = 2.0 * (c[..., 1:2] / in_h) - 1.0
    g = gauss_ref[...]
    proj = 2.0 * jnp.pi * (cx * g[0:1, :] + cy * g[1:2, :])
    pe = jnp.concatenate([jnp.sin(proj), jnp.cos(proj)], axis=-1)
    lab = labels_ref[...][..., None]
    pe = jnp.where(lab == -1, 0.0, pe)
    pe = pe + jnp.where(lab == -1, nap_ref[...], 0.0)
    pe = pe + jnp.where(lab == 0, pe0_ref[...], 0.0)
    pe = pe + jnp.where(lab == 1, pe1_ref[...], 0.0)
    o_ref[...] = pe


def _decoder_kernel(*refs, nh):
    # ONE fused kernel for the whole TwoWayTransformer: grid = (Bp, depth).
    # queries/keys live in VMEM scratch across layers; per-layer weights are
    # streamed via stacked BlockSpecs; the final attn + LN run on the last step.
    (q0_ref, k0_ref, qpe_ref, kpe_ref,
     sa_qw, sa_qb, sa_kw, sa_kb, sa_vw, sa_vb, sa_ow, sa_ob, ln1w, ln1b,
     ti_qw, ti_qb, ti_kw, ti_kb, ti_vw, ti_vb, ti_ow, ti_ob, ln2w, ln2b,
     mw1, mb1, mw2, mb2, ln3w, ln3b,
     it_qw, it_qb, it_kw, it_kb, it_vw, it_vb, it_ow, it_ob, ln4w, ln4b,
     f_qw, f_qb, f_kw, f_kb, f_vw, f_vb, f_ow, f_ob, f_lnw, f_lnb,
     qo_ref, ko_ref, q_state, k_state) = refs

    layer = pl.program_id(1)

    @pl.when(layer == 0)
    def _():
        q_state[...] = q0_ref[...]
        k_state[...] = k0_ref[...]

    queries = q_state[...]
    keys = k_state[...]
    qpe = qpe_ref[...]
    kpe = kpe_ref[...]
    not_first = (layer > 0).astype(jnp.float32)

    # Self-attention on tokens (first layer skips the PE and drops the residual).
    q = queries + not_first * qpe
    attn = _mha(q, q, queries,
                _ld(sa_qw, sa_qb, sa_kw, sa_kb, sa_vw, sa_vb, sa_ow, sa_ob), nh)
    queries = not_first * queries + attn
    queries = _ln(queries, ln1w[...], ln1b[...], 1e-5)

    # Cross attention: tokens -> image.
    q = queries + qpe
    k = keys + kpe
    queries = queries + _mha(q, k, keys,
                             _ld(ti_qw, ti_qb, ti_kw, ti_kb, ti_vw, ti_vb, ti_ow, ti_ob), nh)
    queries = _ln(queries, ln2w[...], ln2b[...], 1e-5)

    # Token MLP.
    h = jnp.maximum(_lin(queries, mw1[...], mb1[...]), 0.0)
    h = _lin(h, mw2[...], mb2[...])
    queries = _ln(queries + h, ln3w[...], ln3b[...], 1e-5)

    # Cross attention: image -> tokens.
    q = queries + qpe
    k = keys + kpe
    keys = keys + _mha(k, q, queries,
                       _ld(it_qw, it_qb, it_kw, it_kb, it_vw, it_vb, it_ow, it_ob), nh)
    keys = _ln(keys, ln4w[...], ln4b[...], 1e-5)

    q_state[...] = queries
    k_state[...] = keys

    @pl.when(layer == pl.num_programs(1) - 1)
    def _():
        qf = queries + qpe
        kf = keys + kpe
        a = _mha(qf, kf, keys,
                 _ld(f_qw, f_qb, f_kw, f_kb, f_vw, f_vb, f_ow, f_ob), nh)
        qo_ref[...] = _ln(queries + a, f_lnw[...], f_lnb[...], 1e-5)
        ko_ref[...] = keys


def _mask_out_kernel(src_ref, mtok_ref, itok_ref,
                     up1w, up1b, uplnw, uplnb, up2w, up2b,
                     hw1, hb1, hw2, hb2, hw3, hb3,
                     iw1, ib1, iw2, ib2, iw3, ib3,
                     masks_ref, iou_ref, *, c1, c2):
    # Fused output head: both ConvTranspose2d(k=2,s=2) stages + LayerNorm2d +
    # GELUs + hypernetwork MLPs + mask dot products + IoU MLP.  The upscaled
    # features never leave VMEM; masks_raw[t] holds the logits for tap combo t.
    B, L, Cp = src_ref.shape
    nmt = mtok_ref.shape[1]
    mt = mtok_ref[...]

    w1 = hw1[...]; b1 = hb1[...]
    w2h = hw2[...]; b2h = hb2[...]
    w3 = hw3[...]; b3 = hb3[...]
    hs = []
    for n in range(nmt):
        h = mt[:, n, :]
        h = jnp.maximum(_mm(h, w1[n]) + b1[n], 0.0)
        h = jnp.maximum(_mm(h, w2h[n]) + b2h[n], 0.0)
        hs.append(_mm(h, w3[n]) + b3[n])
    hyper = jnp.stack(hs, axis=1)                       # (B, nmt, c2)

    x = src_ref[...].reshape(B * L, Cp)
    uw1 = up1w[...]
    uw2 = up2w[...]
    ub2 = up2b[...]
    for t1 in range(4):                                  # first deconv taps (kh1,kw1)
        y = _mm(x, uw1[:, t1 * c1:(t1 + 1) * c1]) + up1b[...]
        y = _gelu(_ln(y, uplnw[...], uplnb[...], 1e-6))
        for t2 in range(4):                              # second deconv taps (kh2,kw2)
            z = _gelu(_mm(y, uw2[:, t2 * c2:(t2 + 1) * c2]) + ub2)
            z3 = z.reshape(B, L, c2)
            m = jnp.einsum("bnd,bld->bnl", hyper.astype(BF16), z3.astype(BF16),
                           preferred_element_type=jnp.float32)
            masks_ref[t1 * 4 + t2] = m

    it = itok_ref[...]
    u = jnp.maximum(_mm(it, iw1[...]) + ib1[...], 0.0)
    u = jnp.maximum(_mm(u, iw2[...]) + ib2[...], 0.0)
    iou_ref[...] = _mm(u, iw3[...]) + ib3[...]


# --------------------------------------------------------------------------
# Spec helpers / compiler params
# --------------------------------------------------------------------------
_VIT_KEYS = ("ln1_w", "ln1_b", "qkv_w", "qkv_b", "proj_w", "proj_b",
             "ln2_w", "ln2_b", "mlp_w1", "mlp_b1", "mlp_w2", "mlp_b2")

_DEC_KEYS = ("sa_qw", "sa_qb", "sa_kw", "sa_kb", "sa_vw", "sa_vb", "sa_ow", "sa_ob",
             "ln1_w", "ln1_b",
             "ti_qw", "ti_qb", "ti_kw", "ti_kb", "ti_vw", "ti_vb", "ti_ow", "ti_ob",
             "ln2_w", "ln2_b",
             "mlp_w1", "mlp_b1", "mlp_w2", "mlp_b2", "ln3_w", "ln3_b",
             "it_qw", "it_qb", "it_kw", "it_kb", "it_vw", "it_vb", "it_ow", "it_ob",
             "ln4_w", "ln4_b")

_FINAL_KEYS = ("f_qw", "f_qb", "f_kw", "f_kb", "f_vw", "f_vb", "f_ow", "f_ob",
               "f_lnw", "f_lnb")


def _stacked_spec(a):
    """Per-grid-step slice along the leading (layer) dim; last grid axis selects it."""
    rest = tuple(a.shape[1:])
    n = len(rest)
    return pl.BlockSpec((None,) + rest, lambda *g, _n=n: (g[-1],) + (0,) * _n)


def _full_spec(a):
    """Whole array resident, constant block index for any grid."""
    n = a.ndim
    return pl.BlockSpec(a.shape, lambda *g, _n=n: (0,) * _n)


def _cparams(sem=None, vmem=32 << 20):
    return pltpu.CompilerParams(dimension_semantics=sem, vmem_limit_bytes=vmem)


# --------------------------------------------------------------------------
# Model pieces (thin JAX glue around the fused kernels)
# --------------------------------------------------------------------------
def preprocess(x, pixel_mean, cfg):
    # Pad raw image to img_size; padded region is filled with the per-channel mean
    # so the normalization folded into the patch weights gives exactly zero there.
    d, h, w = x.shape
    D, Himg, Wimg = cfg["img_size"]
    if D > d:
        mean_c = jnp.concatenate([pixel_mean.astype(F32), jnp.zeros((D - d,), F32)])
    else:
        mean_c = pixel_mean.astype(F32)
    canvas = jnp.broadcast_to(mean_c.reshape(D, 1, 1), (D, Himg, Wimg))
    xd = jnp.pad(x.astype(F32), ((0, D - d), (0, 0), (0, 0)))
    return jax.lax.dynamic_update_slice(canvas, xd, (0, 0, 0))


def image_encoder(x, p, pixel_mean, pixel_std, cfg):
    # x: (B, Cin, H, W) raw padded images.
    B, Cin, H, W = x.shape
    ps = cfg["patch_size"]
    Hp, Wp = H // ps, W // ps
    L = Hp * Wp
    C = cfg["embed_dim"]
    K = Cin * ps * ps

    patches = (x.astype(F32)
               .reshape(B, Cin, Hp, ps, Wp, ps)
               .transpose(0, 2, 4, 1, 3, 5)
               .reshape(B, L, K))

    # Fold (x - mean) / std into the patch-embed weights: w' = w/std, b' = b - (m/s)@w
    d = pixel_mean.shape[0]
    if Cin > d:
        mean_c = jnp.concatenate([pixel_mean.astype(F32), jnp.zeros((Cin - d,), F32)])
        std_c = jnp.concatenate([pixel_std.astype(F32), jnp.ones((Cin - d,), F32)])
    else:
        mean_c = pixel_mean.astype(F32)
        std_c = pixel_std.astype(F32)
    mean_vec = jnp.repeat(mean_c, ps * ps)
    std_vec = jnp.repeat(std_c, ps * ps)
    w_fold = p["patch_w"] / std_vec[:, None]
    b_fold = (p["patch_b"] - (mean_vec / std_vec) @ p["patch_w"]).reshape(1, C)

    # Patch embed, tiled over token rows ('parallel' -> both TCs on v7x).
    if L % 512 == 0:
        Lblk = 512
    elif L % 8 == 0 and (L // 2) % 8 == 0:
        Lblk = L // 2
    else:
        Lblk = L
    tokens0 = pl.pallas_call(
        _patch_embed_kernel,
        grid=(L // Lblk,),
        in_specs=[pl.BlockSpec((B, Lblk, K), lambda i: (0, i, 0)),
                  pl.BlockSpec((K, C), lambda i: (0, 0)),
                  pl.BlockSpec((1, C), lambda i: (0, 0)),
                  pl.BlockSpec((Lblk, C), lambda i: (i, 0))],
        out_specs=pl.BlockSpec((B, Lblk, C), lambda i: (0, i, 0)),
        out_shape=jax.ShapeDtypeStruct((B, L, C), F32),
        compiler_params=_cparams(("parallel",), 32 << 20),
    )(patches, w_fold, b_fold, p["pos_embed"])

    # All ViT blocks in one grid=(depth,) kernel; weights streamed as bf16.
    bf16_keys = {"qkv_w", "proj_w", "mlp_w1", "mlp_w2"}
    vit_args = [p[k].astype(BF16) if k in bf16_keys else p[k] for k in _VIT_KEYS]
    depth = p["qkv_w"].shape[0]
    interm, final_tokens = pl.pallas_call(
        functools.partial(_vit_blocks_kernel, nh=cfg["num_heads"]),
        grid=(depth,),
        in_specs=[pl.BlockSpec((B, L, C), lambda d_: (0, 0, 0))]
                 + [_stacked_spec(a) for a in vit_args],
        out_specs=[pl.BlockSpec((None, B, L, C), lambda d_: (d_, 0, 0, 0)),
                   pl.BlockSpec((B, L, C), lambda d_: (0, 0, 0))],
        out_shape=(jax.ShapeDtypeStruct((depth, B, L, C), BF16),
                   jax.ShapeDtypeStruct((B, L, C), F32)),
        scratch_shapes=[pltpu.VMEM((B, L, C), F32)],
        compiler_params=_cparams(("arbitrary",), 48 << 20),
    )(tokens0, *vit_args)

    # Neck: 1x1 conv + LN + im2col 3x3 conv + LN, one grid step per batch image.
    Cp = cfg["out_chans"]
    w2s = p["neck_w2"].reshape(9 * Cp, Cp).astype(BF16)
    neck_tokens = pl.pallas_call(
        functools.partial(_neck_kernel, Hp=Hp, Wp=Wp),
        grid=(B,),
        in_specs=[pl.BlockSpec((1, L, C), lambda b: (b, 0, 0)),
                  _full_spec(p["neck_w1"]), _full_spec(p["neck_ln1_w"]),
                  _full_spec(p["neck_ln1_b"]), _full_spec(w2s),
                  _full_spec(p["neck_ln2_w"]), _full_spec(p["neck_ln2_b"])],
        out_specs=pl.BlockSpec((1, L, Cp), lambda b: (b, 0, 0)),
        out_shape=jax.ShapeDtypeStruct((B, L, Cp), F32),
        compiler_params=_cparams(("parallel",), 32 << 20),
    )(final_tokens, p["neck_w1"].astype(BF16), p["neck_ln1_w"], p["neck_ln1_b"],
      w2s, p["neck_ln2_w"], p["neck_ln2_b"])

    interm_embeddings = interm.reshape(depth, B, Hp, Wp, C)   # bf16 (halved writeback)
    return neck_tokens, interm_embeddings


def get_dense_pe(p, cfg):
    Hp, Wp = cfg["image_embedding_size"]
    Cp = cfg["prompt_embed_dim"]
    return pl.pallas_call(
        functools.partial(_dense_pe_kernel, H=Hp, W=Wp),
        out_shape=jax.ShapeDtypeStruct((Hp, Wp, Cp), F32),
    )(p["pe_gauss"])


def prompt_encoder(points, boxes, masks, p, cfg):
    Cp = cfg["prompt_embed_dim"]
    Hp, Wp = cfg["image_embedding_size"]
    in_h, in_w = cfg["input_image_size"]

    if points is not None:
        coords, labels = points
        Bp = coords.shape[0]
        if boxes is None:  # pad with a "not a point" entry
            coords = jnp.concatenate([coords.astype(F32), jnp.zeros((Bp, 1, 2), F32)], axis=1)
            labels = jnp.concatenate([labels.astype(jnp.int32),
                                      -jnp.ones((Bp, 1), jnp.int32)], axis=1)
        sparse = pl.pallas_call(
            functools.partial(_point_embed_kernel, in_h=float(in_h), in_w=float(in_w)),
            out_shape=jax.ShapeDtypeStruct((Bp, coords.shape[1], Cp), F32),
        )(coords, labels, p["pe_gauss"], p["not_a_point"], p["point_embed0"], p["point_embed1"])
    else:
        Bp = 1
        sparse = jnp.zeros((Bp, 0, Cp), F32)

    # TODO(synk): box and mask-input prompt branches omitted (both None in this demo).
    dense_nchw = jnp.broadcast_to(p["no_mask_embed"].reshape(1, Cp, 1, 1), (Bp, Cp, Hp, Wp))
    return sparse, dense_nchw


def mask_decoder(curr_tokens, pe_hw, sparse, dense_nchw, multimask_output, p, cfg):
    Cp = cfg["prompt_embed_dim"]
    nh = cfg["decoder_num_heads"]
    nmt = cfg["num_multimask_outputs"] + 1
    Hp, Wp = cfg["image_embedding_size"]
    L = Hp * Wp
    Bp = sparse.shape[0]

    output_tokens = jnp.concatenate([p["iou_token"], p["mask_tokens"]], axis=0)
    tokens = jnp.concatenate(
        [jnp.broadcast_to(output_tokens[None], (Bp,) + output_tokens.shape), sparse], axis=1)
    Nt = tokens.shape[1]

    dense_tokens = dense_nchw.transpose(0, 2, 3, 1).reshape(Bp, L, Cp)
    src = jnp.broadcast_to(curr_tokens[None], (Bp, L, Cp)) + dense_tokens
    pos = jnp.broadcast_to(pe_hw.reshape(1, L, Cp), (Bp, L, Cp))

    # Fused TwoWayTransformer (all layers + final attn) in one kernel.
    tr = p["transformer"]
    dd = tr["layers"]["sa_qw"].shape[0]
    layer_args = [tr["layers"][k] for k in _DEC_KEYS]
    final_args = [tr[k] for k in _FINAL_KEYS]
    tok_spec = pl.BlockSpec((1, Nt, Cp), lambda b, d: (b, 0, 0))
    img_spec = pl.BlockSpec((1, L, Cp), lambda b, d: (b, 0, 0))
    queries, keys = pl.pallas_call(
        functools.partial(_decoder_kernel, nh=nh),
        grid=(Bp, dd),
        in_specs=[tok_spec, img_spec, tok_spec, img_spec]
                 + [_stacked_spec(a) for a in layer_args]
                 + [_full_spec(a) for a in final_args],
        out_specs=[tok_spec, img_spec],
        out_shape=(jax.ShapeDtypeStruct((Bp, Nt, Cp), F32),
                   jax.ShapeDtypeStruct((Bp, L, Cp), F32)),
        scratch_shapes=[pltpu.VMEM((1, Nt, Cp), F32), pltpu.VMEM((1, L, Cp), F32)],
        compiler_params=_cparams(("parallel", "arbitrary"), 48 << 20),
    )(tokens, src, tokens, pos, *layer_args, *final_args)

    iou_token_out = queries[:, 0, :]
    mask_tokens_out = queries[:, 1:1 + nmt, :]

    # Fused upscaler + hyper-MLPs + mask dot products + IoU head.
    c1 = Cp // 4
    c2 = Cp // 8
    masks_raw, iou_pred = pl.pallas_call(
        functools.partial(_mask_out_kernel, c1=c1, c2=c2),
        out_shape=(jax.ShapeDtypeStruct((16, Bp, nmt, L), F32),
                   jax.ShapeDtypeStruct((Bp, nmt), F32)),
        compiler_params=_cparams(None, 48 << 20),
    )(keys, mask_tokens_out, iou_token_out,
      p["up1_w"], p["up1_b"], p["up_ln_w"], p["up_ln_b"], p["up2_w"], p["up2_b"],
      p["hyper_w1"], p["hyper_b1"], p["hyper_w2"], p["hyper_b2"], p["hyper_w3"], p["hyper_b3"],
      p["iou_w1"], p["iou_b1"], p["iou_w2"], p["iou_b2"], p["iou_w3"], p["iou_b3"])

    # Pixel-shuffle interleave on the small mask logits (glue, not features):
    # tap index t = (kh1, kw1, kh2, kw2); pixel (4h + 2kh1 + kh2, 4w + 2kw1 + kw2).
    masks = (masks_raw.reshape(2, 2, 2, 2, Bp, nmt, Hp, Wp)
                      .transpose(4, 5, 6, 0, 2, 7, 1, 3)
                      .reshape(Bp, nmt, 4 * Hp, 4 * Wp))

    if multimask_output:
        return masks[:, 1:], iou_pred[:, 1:]
    return masks[:, :1], iou_pred[:, :1]


def postprocess_masks(masks, input_size, original_size):
    # TODO(synk): reference uses 3-D trilinear interpolation (volumetric SAM);
    # masks here are 2-D so a (bi)linear resize of the spatial dims is used.
    del input_size
    B, C = masks.shape[:2]
    return jax.image.resize(masks, (B, C) + tuple(original_size), method="linear")


def sam_forward(params, cfg, batched_input, multimask_output):
    input_images = jnp.stack(
        [preprocess(rec["image"], params["pixel_mean"], cfg) for rec in batched_input], axis=0)

    neck_tokens, interm_embeddings = image_encoder(
        input_images, params["image_encoder"], params["pixel_mean"], params["pixel_std"], cfg)

    Hp, Wp = cfg["image_embedding_size"]
    Cp = cfg["prompt_embed_dim"]
    pe_hw = get_dense_pe(params["prompt_encoder"], cfg)          # (Hp, Wp, Cp)
    dense_pe_nchw = pe_hw.transpose(2, 0, 1)[None]               # (1, Cp, Hp, Wp)
    image_embeddings_nchw = neck_tokens.reshape(-1, Hp, Wp, Cp).transpose(0, 3, 1, 2)

    outputs = []
    for idx, rec in enumerate(batched_input):
        points = (rec["point_coords"], rec["point_labels"]) if "point_coords" in rec else None
        sparse, dense_nchw = prompt_encoder(
            points, rec.get("boxes"), rec.get("mask_inputs"), params["prompt_encoder"], cfg)
        low_res_masks, iou_pred = mask_decoder(
            neck_tokens[idx], pe_hw, sparse, dense_nchw, multimask_output,
            params["mask_decoder"], cfg)
        masks = postprocess_masks(low_res_masks, rec["image"].shape[-3:], rec["original_size"])
        masks = masks > cfg["mask_threshold"]
        outputs.append({
            "masks": masks,
            "iou_predictions": iou_pred,
            "low_res_logits": low_res_masks,
            "encoder_embedding": image_embeddings_nchw[idx][None],
            "image_pe": dense_pe_nchw,
            "sparse_embeddings": sparse,
            "dense_embeddings": dense_nchw,
        })
    return outputs, interm_embeddings


# --------------------------------------------------------------------------
# Deterministic parameter initialization
# --------------------------------------------------------------------------
def make_cfg():
    return dict(
        img_size=(3, 16, 16),          # (C/D, H, W) as used by Sam.preprocess
        patch_size=4,
        embed_dim=32,
        depth=2,
        num_heads=2,
        mlp_ratio=2,
        out_chans=32,
        prompt_embed_dim=32,
        image_embedding_size=(4, 4),
        input_image_size=(16, 16),
        num_multimask_outputs=3,
        decoder_depth=2,
        decoder_num_heads=2,
        decoder_mlp_dim=64,
        iou_head_hidden=16,
        mask_threshold=0.0,
    )


def init_params(key, cfg):
    counter = [0]

    def nk():
        counter[0] += 1
        return jax.random.fold_in(key, counter[0])

    def nrm(shape, scale=0.02):
        return (scale * jax.random.normal(nk(), shape)).astype(F32)

    def zeros(shape):
        return jnp.zeros(shape, F32)

    def ones(shape):
        return jnp.ones(shape, F32)

    D, Himg, Wimg = cfg["img_size"]
    ps = cfg["patch_size"]
    C = cfg["embed_dim"]
    Cp = cfg["prompt_embed_dim"]
    depth = cfg["depth"]
    Hp, Wp = Himg // ps, Wimg // ps
    Ch = C * cfg["mlp_ratio"]
    nmt = cfg["num_multimask_outputs"] + 1
    hid = cfg["iou_head_hidden"]
    dd = cfg["decoder_depth"]
    ci = Cp // 2
    mlp_dim = cfg["decoder_mlp_dim"]

    ie = dict(
        patch_w=nrm((D * ps * ps, C)),
        patch_b=zeros((C,)),
        pos_embed=nrm((Hp * Wp, C)),
        ln1_w=ones((depth, 1, C)), ln1_b=zeros((depth, 1, C)),
        qkv_w=nrm((depth, C, 3 * C)), qkv_b=zeros((depth, 1, 3 * C)),
        proj_w=nrm((depth, C, C)), proj_b=zeros((depth, 1, C)),
        ln2_w=ones((depth, 1, C)), ln2_b=zeros((depth, 1, C)),
        mlp_w1=nrm((depth, C, Ch)), mlp_b1=zeros((depth, 1, Ch)),
        mlp_w2=nrm((depth, Ch, C)), mlp_b2=zeros((depth, 1, C)),
        neck_w1=nrm((C, Cp)),
        neck_ln1_w=ones((1, Cp)), neck_ln1_b=zeros((1, Cp)),
        neck_w2=nrm((9, Cp, Cp)),
        neck_ln2_w=ones((1, Cp)), neck_ln2_b=zeros((1, Cp)),
    )

    pe = dict(
        pe_gauss=nrm((2, Cp // 2), scale=1.0),
        point_embed0=nrm((1, Cp)),
        point_embed1=nrm((1, Cp)),
        not_a_point=nrm((1, Cp)),
        no_mask_embed=nrm((1, Cp)),
    )

    # Stacked decoder layer weights (leading dim = decoder depth).
    md_layers = dict(
        sa_qw=nrm((dd, Cp, Cp)), sa_qb=zeros((dd, 1, Cp)),
        sa_kw=nrm((dd, Cp, Cp)), sa_kb=zeros((dd, 1, Cp)),
        sa_vw=nrm((dd, Cp, Cp)), sa_vb=zeros((dd, 1, Cp)),
        sa_ow=nrm((dd, Cp, Cp)), sa_ob=zeros((dd, 1, Cp)),
        ln1_w=ones((dd, 1, Cp)), ln1_b=zeros((dd, 1, Cp)),
        ti_qw=nrm((dd, Cp, ci)), ti_qb=zeros((dd, 1, ci)),
        ti_kw=nrm((dd, Cp, ci)), ti_kb=zeros((dd, 1, ci)),
        ti_vw=nrm((dd, Cp, ci)), ti_vb=zeros((dd, 1, ci)),
        ti_ow=nrm((dd, ci, Cp)), ti_ob=zeros((dd, 1, Cp)),
        ln2_w=ones((dd, 1, Cp)), ln2_b=zeros((dd, 1, Cp)),
        mlp_w1=nrm((dd, Cp, mlp_dim)), mlp_b1=zeros((dd, 1, mlp_dim)),
        mlp_w2=nrm((dd, mlp_dim, Cp)), mlp_b2=zeros((dd, 1, Cp)),
        ln3_w=ones((dd, 1, Cp)), ln3_b=zeros((dd, 1, Cp)),
        it_qw=nrm((dd, Cp, ci)), it_qb=zeros((dd, 1, ci)),
        it_kw=nrm((dd, Cp, ci)), it_kb=zeros((dd, 1, ci)),
        it_vw=nrm((dd, Cp, ci)), it_vb=zeros((dd, 1, ci)),
        it_ow=nrm((dd, ci, Cp)), it_ob=zeros((dd, 1, Cp)),
        ln4_w=ones((dd, 1, Cp)), ln4_b=zeros((dd, 1, Cp)),
    )
    transformer = dict(
        layers=md_layers,
        f_qw=nrm((Cp, ci)), f_qb=zeros((1, ci)),
        f_kw=nrm((Cp, ci)), f_kb=zeros((1, ci)),
        f_vw=nrm((Cp, ci)), f_vb=zeros((1, ci)),
        f_ow=nrm((ci, Cp)), f_ob=zeros((1, Cp)),
        f_lnw=ones((1, Cp)), f_lnb=zeros((1, Cp)),
    )

    md = dict(
        iou_token=nrm((1, Cp)),
        mask_tokens=nrm((nmt, Cp)),
        transformer=transformer,
        # ConvTranspose2d(k=2, s=2) weights stored as (Cin, 4*Cout), columns ordered
        # (kh, kw, Cout).  TODO(synk): permute when importing real PyTorch weights.
        up1_w=nrm((Cp, 4 * (Cp // 4))),
        up1_b=zeros((1, Cp // 4)),
        up_ln_w=ones((1, Cp // 4)), up_ln_b=zeros((1, Cp // 4)),
        up2_w=nrm((Cp // 4, 4 * (Cp // 8))),
        up2_b=zeros((1, Cp // 8)),
        hyper_w1=nrm((nmt, Cp, Cp)), hyper_b1=zeros((nmt, 1, Cp)),
        hyper_w2=nrm((nmt, Cp, Cp)), hyper_b2=zeros((nmt, 1, Cp)),
        hyper_w3=nrm((nmt, Cp, Cp // 8)), hyper_b3=zeros((nmt, 1, Cp // 8)),
        iou_w1=nrm((Cp, hid)), iou_b1=zeros((1, hid)),
        iou_w2=nrm((hid, hid)), iou_b2=zeros((1, hid)),
        iou_w3=nrm((hid, nmt)), iou_b3=zeros((1, nmt)),
    )

    return dict(
        pixel_mean=jnp.array([123.675, 116.28, 103.53], F32),
        pixel_std=jnp.array([58.395, 57.12, 57.375], F32),
        image_encoder=ie,
        prompt_encoder=pe,
        mask_decoder=md,
    )


# --------------------------------------------------------------------------
# Demo
# --------------------------------------------------------------------------
if __name__ == "__main__":
    cfg = make_cfg()
    root = jax.random.PRNGKey(0)
    pkey, dkey = jax.random.split(root)
    params = init_params(pkey, cfg)

    batched_input = []
    for kk in jax.random.split(dkey, 2):
        ka, kb, kc = jax.random.split(kk, 3)
        image = jax.random.uniform(ka, (3, 12, 12), F32, 0.0, 255.0)       # 3xHxW
        point_coords = jax.random.uniform(kb, (2, 2, 2), F32, 0.0, 16.0)   # BxNx2
        point_labels = jax.random.randint(kc, (2, 2), 0, 2).astype(jnp.int32)  # BxN
        batched_input.append(dict(
            image=image,
            original_size=(24, 24),
            point_coords=point_coords,
            point_labels=point_labels,
        ))

    outputs, interm_embeddings = sam_forward(
        params, cfg, batched_input, multimask_output=True)

    for rec_out in outputs:
        jax.block_until_ready(rec_out["masks"])
        jax.block_until_ready(rec_out["iou_predictions"])
        jax.block_until_ready(rec_out["low_res_logits"])
    jax.block_until_ready(interm_embeddings)

    assert outputs[0]["masks"].shape == (2, 3, 24, 24)
    assert outputs[0]["iou_predictions"].shape == (2, 3)
    assert outputs[0]["low_res_logits"].shape == (2, 3, 16, 16)
    print("KERNEL_OK")
</pallas_src>

<mosaic_0001>
module attributes {stable_mosaic.version = 11 : i64} {
  func.func @_patch_embed_kernel(%arg0: i32, %arg1: memref<2x8x48xf32, #tpu.memory_space<vmem>>, %arg2: memref<48x32xf32, #tpu.memory_space<vmem>>, %arg3: memref<1x32xf32, #tpu.memory_space<vmem>>, %arg4: memref<8x32xf32, #tpu.memory_space<vmem>>, %arg5: memref<2x8x32xf32, #tpu.memory_space<vmem>>) attributes {dimension_semantics = [#tpu.dimension_semantics<parallel>], iteration_bounds = array<i64: 2>, scalar_prefetch = 0 : i64, scratch_operands = 0 : i64, tpu.core_type = #tpu.core_type<tc>, window_params = [{transform_indices = @transform_0, window_bounds = array<i64: 2, 8, 48>}, {pipeline_mode = #tpu.pipeline_mode<synchronous>, transform_indices = @transform_1, window_bounds = array<i64: 48, 32>}, {pipeline_mode = #tpu.pipeline_mode<synchronous>, transform_indices = @transform_2, window_bounds = array<i64: 1, 32>}, {transform_indices = @transform_3, window_bounds = array<i64: 8, 32>}, {transform_indices = @transform_4, window_bounds = array<i64: 2, 8, 32>}]} {
    %c0 = arith.constant 0 : index
    %c0_0 = arith.constant 0 : index
    %c0_1 = arith.constant 0 : index
    %0 = vector.load %arg1[%c0, %c0_0, %c0_1] : memref<2x8x48xf32, #tpu.memory_space<vmem>>, vector<2x8x48xf32>
    %1 = vector.shape_cast %0 : vector<2x8x48xf32> to vector<16x48xf32>
    %c0_2 = arith.constant 0 : index
    %c0_3 = arith.constant 0 : index
    %2 = vector.load %arg2[%c0_2, %c0_3] : memref<48x32xf32, #tpu.memory_space<vmem>>, vector<48x32xf32>
    %3 = arith.truncf %1 : vector<16x48xf32> to vector<16x48xbf16>
    %4 = arith.truncf %2 : vector<48x32xf32> to vector<48x32xbf16>
    %cst = arith.constant dense<0.000000e+00> : vector<16x32xf32>
    %5 = tpu.matmul %3, %4, %cst {dimension_numbers = #tpu.dot_dimension_numbers<[1], [0], [0], [1], [0, 0, 1, 1], [], []>} : vector<16x48xbf16>, vector<48x32xbf16>, vector<16x32xf32> -> vector<16x32xf32>
    %c0_4 = arith.constant 0 : index
    %c0_5 = arith.constant 0 : index
    %6 = vector.load %arg3[%c0_4, %c0_5] : memref<1x32xf32, #tpu.memory_space<vmem>>, vector<1x32xf32>
    %7 = vector.broadcast %6 : vector<1x32xf32> to vector<16x32xf32>
    %8 = arith.addf %5, %7 : vector<16x32xf32>
    %9 = vector.shape_cast %8 : vector<16x32xf32> to vector<2x8x32xf32>
    %c0_6 = arith.constant 0 : index
    %c0_7 = arith.constant 0 : index
    %10 = vector.load %arg4[%c0_6, %c0_7] : memref<8x32xf32, #tpu.memory_space<vmem>>, vector<8x32xf32>
    %11 = vector.shape_cast %10 : vector<8x32xf32> to vector<1x8x32xf32>
    %12 = vector.broadcast %11 : vector<1x8x32xf32> to vector<2x8x32xf32>
    %13 = arith.addf %9, %12 : vector<2x8x32xf32>
    %c0_8 = arith.constant 0 : index
    %c0_9 = arith.constant 0 : index
    %c0_10 = arith.constant 0 : index
    %14 = vector.load %arg5[%c0_8, %c0_9, %c0_10] : memref<2x8x32xf32, #tpu.memory_space<vmem>>, vector<2x8x32xf32>
    tpu.vector_store %arg5[%c0_8, %c0_9, %c0_10], %13 {strides = array<i32>} : memref<2x8x32xf32, #tpu.memory_space<vmem>>, vector<2x8x32xf32>,
    return
  }
  func.func @transform_0(%arg0: i32) -> (i32, i32, i32) {
    %c0_i32 = arith.constant 0 : i32
    %c0_i32_0 = arith.constant 0 : i32
    %c0_i32_1 = arith.constant 0 : i32
    return %c0_i32, %arg0, %c0_i32_0 : i32, i32, i32
  }
  func.func @transform_1(%arg0: i32) -> (i32, i32) {
    %c0_i32 = arith.constant 0 : i32
    %c0_i32_0 = arith.constant 0 : i32
    %c0_i32_1 = arith.constant 0 : i32
    return %c0_i32, %c0_i32_0 : i32, i32
  }
  func.func @transform_2(%arg0: i32) -> (i32, i32) {
    %c0_i32 = arith.constant 0 : i32
    %c0_i32_0 = arith.constant 0 : i32
    %c0_i32_1 = arith.constant 0 : i32
    return %c0_i32, %c0_i32_0 : i32, i32
  }
  func.func @transform_3(%arg0: i32) -> (i32, i32) {
    %c0_i32 = arith.constant 0 : i32
    %c0_i32_0 = arith.constant 0 : i32
    return %arg0, %c0_i32 : i32, i32
  }
  func.func @transform_4(%arg0: i32) -> (i32, i32, i32) {
    %c0_i32 = arith.constant 0 : i32
    %c0_i32_0 = arith.constant 0 : i32
    %c0_i32_1 = arith.constant 0 : i32
    return %c0_i32, %arg0, %c0_i32_0 : i32, i32, i32
  }
}

</mosaic_0001>

<bundles_post_ra>
// kernel: tpu_custom_call.1
= control target key start
LH: loop header
LB: loop body
LE: loop exit
PB: predicated region body
PF: predicated region fallthrough
CT: control target
= control target key end

     0   :  { %9 = vsyncpa [#allocation4], 0  ;;  %s721_s0 = inlined_call_operand.vmem [shape: f32[2,16,48], index: 0, kind: input, shape index: {}]   ;;  %s722_s1 = inlined_call_operand.vmem [shape: f32[48,32], index: 1, kind: input, shape index: {}]   ;;  %s723_s2 = inlined_call_operand.vmem [shape: f32[1,32], index: 2, kind: input, shape index: {}]   ;;  %s724_s3 = inlined_call_operand.vmem [shape: f32[16,32], index: 3, kind: input, shape index: {}]   ;;  %s725_s4 = inlined_call_operand.hbm [shape: f32[2,16,32], index: 4, kind: output, shape index: {}]  }
   0x1   :  { %11 = vsyncpa [#allocation4 + $0x1], 0  ;;  %s583_s15 = smov 0   ;;  %s585_s16 = smov 0  }
   0x2   :  { %s587_s17 = smov 0   ;;  %s589_s18 = smov 0  }
   0x3 LB: > { %s604_s19 = sadd.s32 4294967295, %s550_s18   ;;  %s415_s20 = sadd.s32 4294967294, %s550_s18   ;;  %s550_s18 = sphi %s589_s18, %s731_s18   ;;  %s546_s17 = sphi %s587_s17, %s730_s17   ;;  %s542_s16 = sphi %s585_s16, %s729_s16   ;;  %s538_s15 = sphi %s583_s15, %s728_s15  }
   0x4   : > { %s608_s21 = sadd.s32 1, %s550_s18   ;;  %s24_s22 = sadd.s32 1, %s546_s17 }
   0x5   : > { %s21_s23 = ssub.s32 %s550_s18, %s608_s21  ;;  %p31_p0 = scmp.ne.s32.totalorder %s546_s17, %s542_s16 }
   0x6   : > { %p22_p1 = scmp.eq.s32.totalorder %s21_s23, 0  ;;  %p32_p2 = scmp.eq.s32.totalorder %s550_s18, 0 }
   0x7   : > { %p129_p3 = scmp.eq.s32.totalorder %s604_s19, 1  ;;  %p134_p4 = scmp.ne.s32.totalorder %s542_s16, %s538_s15 }
   0x8   : > { %s620_s24 = scalar_select %p22_p1, %s546_s17, %s24_s22  }
   0x9   : > { %p33_p5 = por %p32_p2, %p31_p0  ;;  %p622_p6 = por %p129_p3, %p31_p0 }
   0xa   : > { %p135_p7 = scmp.eq.s32.totalorder %s415_s20, 1  ;;  %p417_p9 = scmp.ge.s32.totalorder %s550_s18, 2 }
   0xc   : > { %p626_p8 = por %p135_p7, %p134_p4  ;;  %157 = sbr.rel (%p417_p9) target bundleno = 26 (0x1a), region = 24 }
  0x13   : > { %160 = sbr.rel (!%p33_p5) target bundleno = 26 (0x1a), region = 28  ;;  %s162_s27 = sand.u32 (%p33_p5), 1, %s546_s17  }
  0x14   : > { %s419_s28 = sshll.u32 (%p33_p5), %s550_s18, 3  ;;  %s418_s29 = sshll.u32 (%p33_p5), %s162_s27, 4 }
  0x15   : > { %s166_s6 = scalar_lea.vmem (%p33_p5), %s721_s0, %s419_s28  ;;  %s164_s7 = scalar_lea.vmem (%p33_p5), [#allocation2], %s418_s29 }
  0x16   : > { %v196_v0 = vld [vmem:[%s166_s6] sm:$0xff] (%p33_p5)  ;;  %v198_v1 = vld [vmem:[%s166_s6 + $0x10] sm:$0xff] (%p33_p5) }
  0x17   : > { %197 = vst [vmem:[%s164_s7] sm:$0xff] (%p33_p5), %v196_v0  ;;  %199 = vst [vmem:[%s164_s7 + $0x8] sm:$0xff] (%p33_p5), %v198_v1 }
  0x1a PF: > { %p420_p10 = scmp.ge.s32.totalorder %s550_s18, 1  ;;  %p211_p11 = scmp.lt.s32.totalorder %s550_s18, 3 }
  0x1c   : > { %p212_p12 = pnand %p420_p10, %p211_p11 }
  0x1d   : > { %v254_v2 = vld [vmem:[%s722_s1] sm:$0xff] (!%p212_p12)  ;;  %v255_v3 = vld [vmem:[%s722_s1 + $0x8] sm:$0xff] (!%p212_p12)  ;;  %v256_v4 = vld [vmem:[%s722_s1 + $0x10] sm:$0xff] (!%p212_p12)  ;;  %s218_s14 = sand.u32 (!%p212_p12), 1, %s542_s16   ;;  %v552_v5 = vmov (!%p212_p12), 0.0   ;;  %vm553_vm0 = vmmov (!%p212_p12), 0  }
  0x1e   : > { %215 = sbr.rel (%p212_p12) target bundleno = 277 (0x115), region = 70  ;;  %434 = vmatprep.subr.bf16.mxu0 (!%p212_p12), %v552_v5  ;;  %v261_v6 = vpack.c.bf16 (!%p212_p12), %v255_v3, %v254_v2  ;;  %v257_v7 = vld [vmem:[%s722_s1 + $0x18] sm:$0xff] (!%p212_p12)  ;;  %440 = vmatprep.mubr.msk.bf16.mxu0 (!%p212_p12), %vm553_vm0, %v552_v5  ;;  %s421_s23 = sshll.u32 (!%p212_p12), %s218_s14, 4  ;;  %v258_v9 = vld [vmem:[%s722_s1 + $0x20] sm:$0xff] (!%p212_p12)  ;;  %v259_v10 = vld [vmem:[%s722_s1 + $0x28] sm:$0xff] (!%p212_p12)  ;;  %vm271_vm1 = vcmask (!%p212_p12), 392192  }
  0x1f   : > { %v262_v8 = vpack.c.bf16 (!%p212_p12), %v257_v7, %v256_v4  ;;  %v263_v11 = vpack.c.bf16 (!%p212_p12), %v259_v10, %v258_v9  ;;  %s220_s5 = scalar_lea.vmem (!%p212_p12), [#allocation2], %s421_s23  ;;  %p247_p13 = scmp.lt.s32.totalorder (!%p212_p12), %s604_s19, 1  ;;  %v424_v15 = vld [vmem:[%s723_s2] ss:$0 sm:$0xff] (!%p212_p12)  ;;  %vm319_vm2 = vcmask (!%p212_p12), 261120  }
  0x20   : > { %435 = vmatpush3.bf16.msra.mxu0 (!%p212_p12), %v261_v6  ;;  %v252_v12 = vld [vmem:[%s220_s5] sm:$0xff] (!%p212_p12)  ;;  %v253_v13 = vld [vmem:[%s220_s5 + $0x8] sm:$0xff] (!%p212_p12)  ;;  %s246_s13 = scalar_lea.vmem (!%p212_p12), [#allocation3], %s421_s23  ;;  %s427_s22 = sshll.u32 (!%p212_p12), %s604_s19, 7 }
  0x21   : > { %436 = vmatprep.subr.bf16.mxu0 (!%p212_p12), %v552_v5  ;;  %v260_v14 = vpack.c.bf16 (!%p212_p12), %v253_v13, %v252_v12  ;;  %s335_s20 = sshll.u32 (!%p212_p12), %s246_s13, 4  ;;  %s675_s29 = scalar_lea.hbm (!%p212_p12), %s725_s4, %s427_s22  ;;  %s670_s20 = int_to_ptr.vmem [resolvable:$true] %s335_s20 }
  0x22   : > { %s488_s23 = scalar_lea.vmem (!%p212_p12), %s670_s20, 256  ;;  %s554_s30 = smov (!%p212_p12), [#allocation3]  }
  0x23   : > { %p489_p0 = scmp.ne.s32.totalorder (!%p212_p12), %s670_s20, %s488_s23  ;;  %s492_s5 = sshll.u32 (!%p212_p12), %s554_s30, 4  ;;  %s493_s5 = int_to_ptr.vmem [resolvable:$false] %s492_s5 }
  0x24   : > { %437 = vmatpush3.bf16.msra.mxu0 (!%p212_p12), %v262_v8  ;;  %p495_p3 = scmp.lt.s32.totalorder (!%p212_p12), %s670_s20, %s493_s5 }
  0x25   : > { %438 = vmatprep.subr.bf16.mxu0 %v552_v5  ;;  %s248_s6 = scalar_select %p247_p13, %s604_s19, 1 }
  0x26   : > { %s679_s19 = scalar_lea.sflag [#allocation4], %s218_s14  ;;  %p490_p1 = pnand %p489_p0, %p622_p6 }
  0x27   : > { %s423_s7 = sshll.u32 %s248_s6, 3  ;;  %s494_s6 = scalar_lea.vmem %s493_s5, 512 }
  0x28   : > { %439 = vmatpush3.bf16.msra.mxu0 %v263_v11  ;;  %s250_s10 = scalar_lea.vmem %s724_s3, %s423_s7  ;;  %p491_p2 = pneg %p490_p1 }
  0x29   : > { %v316_v17 = vld [vmem:[%s250_s10] sm:$0xff]  ;;  %p496_p4 = scmp.lt.s32.totalorder %s494_s6, %s488_s23 }
  0x2b   : > { %441 = vmatmul.mubr.msk.bf16.vlgmr.msra.gmra.mrb[0].mxu0 %vm271_vm1, %v260_v14  ;;  %p497_p5 = por %p496_p4, %p495_p3 }
  0x2d   : > { %p498_p7 = pnand %p497_p5, %p491_p2 }
  0xfe   : > { %v309_v16 = vpop.f32.mrb[0].mxu0 }
  0xff   : > { %v310_v18 = vadd.f32 %v424_v15, %v309_v16  ;;  %v442_v19 = vpop.f32.mrb[1].mxu0 }
 0x100   : > { %v312_v20 = vpop.f32.mrb[2].mxu0 }
 0x101   : > { %v317_v21 = vadd.f32 %v316_v17, %v310_v18  ;;  %v313_v22 = vadd.f32 %v424_v15, %v312_v20  ;;  %v443_v23 = vpop.f32.mrb[3].mxu0 }
 0x103   : > { %320 = vst.msk [vmem:[%s246_s13] sm:$0xff] %vm319_vm2, %v317_v21  ;;  %v318_v24 = vadd.f32 %v316_v17, %v313_v22 }
 0x105   : > { %321 = vst.msk [vmem:[%s246_s13 + $0x8] sm:$0xff] %vm319_vm2, %v318_v24 }
 0x106   : > { %501 = shalt.err (!%p498_p7)
}
 0x107   : > { %s502_s14 = scalar_lea.hbm %s675_s29, 256  ;;  %s506_s9 = scalar_lea.hbm %s725_s4, 512 }
 0x108   : > { %p503_p10 = scmp.ne.s32.totalorder %s675_s29, %s502_s14  ;;  %p507_p13 = scmp.lt.u32.totalorder %s675_s29, %s725_s4 }
 0x109   : > { %p508_p0 = scmp.lt.u32.totalorder %s506_s9, %s502_s14  ;;  %p510_p2 = scmp.lt.u32.totalorder %s502_s14, %s675_s29 }
 0x10a   : > { %p504_p11 = pnand %p503_p10, %p622_p6 }
 0x10b   : > { %p509_p1 = por %p508_p0, %p507_p13 }
 0x10c   : > { %p505_p12 = pneg %p504_p11 }
 0x10d   : > { %p511_p3 = por %p510_p2, %p509_p1 }
 0x10f   : > { %p512_p4 = pnand %p511_p3, %p505_p12 }
 0x111   : > { %515 = shalt.err (!%p512_p4)
}
 0x112   : > { %s555_s12 = smov 128   ;;  %s556_s13 = smov 256  }
 0x113   : > { %s557_s22 = smov 8  }
 0x114   : > { %444 = dma.vmem_to_hbm [thread:$0]  (%p622_p6), %s670_s20, 256, %s675_s29, %s679_s19, %s555_s12, %s556_s13, %s557_s22  }
 0x115 PF: > { %s350_s27 = sand.u32 1, %s538_s15   ;;  %p447_p5 = pnand %p417_p9, %p626_p8 }
 0x116   : > { %s351_s28 = scalar_lea.sflag [#allocation4], %s350_s27 }
 0x117   : > { %533 = dma.done.wait (!%p447_p5), %s351_s28, 256  }
 0x118   : > { %535 = vsyncadd (!%p447_p5), %s351_s28, 4294967040  ;;  %p14_p7 = scmp.ge.s32.totalorder %s608_s21, 4   ;;  %s728_s15 = smov %s542_s16 }
 0x119   : > { %s729_s16 = smov %s546_s17  ;;  %s730_s17 = smov %s620_s24 }
 0x11a   : > { %s731_s18 = smov %s608_s21  ;;  %16 = sbr.rel (!%p14_p7) target bundleno = 3 (0x3), region = 117 }
 0x121   :  { %356 = vsyncpa [#allocation4], 1 }
 0x122   :  { %358 = vsyncpa [#allocation4 + $0x1], 1 }

</bundles_post_ra>
